<compile_context>
chip_gen: v7x
topology: tpu7x:2x2x1
jax: 0.10.0
libtpu: 0.0.40
codegen_flags: <defaults>
</compile_context>

<pallas_src>
import functools

import jax
import jax.numpy as jnp
import numpy as np
from jax.experimental import pallas as pl
from jax.experimental.pallas import tpu as pltpu


def _vmem_limit_bytes():
    """Per-generation scoped-VMEM budget: ~7/8 of physical, capped at 100 MiB
    (v5e/v6e: 128 MiB physical -> 100 MiB; v7x: 64 MiB physical -> 56 MiB)."""
    try:
        cap = pltpu.get_tpu_info().vmem_capacity_bytes
    except Exception:
        cap = 64 * 1024 * 1024
    return int(min(100 * 1024 * 1024, cap * 7 // 8))


# ---------------------------------------------------------------------------
# Kernels
# ---------------------------------------------------------------------------

def _encoder_kernel(x_ref, w_ref, b_ref, h_ref):
    """node_encoder: h = x @ W_enc + b_enc for one destination-row tile."""
    h = jnp.dot(x_ref[...], w_ref[...], preferred_element_type=jnp.float32)
    h_ref[...] = (h + b_ref[...]).astype(h_ref.dtype)


def _gat_proj_kernel(heads, d, h_ref, w_ref, asrc_ref, adst_ref,
                     xpaug_ref, ad_ref, as_ref):
    """Per-layer GAT projection for one row tile:
       xp     = h @ W                       [T, heads*d]   (bf16 MXU, f32 acc)
       a_dst  = xp @ Adst (block-diagonal)  [T, heads]
       a_src  = xp @ Asrc (block-diagonal)  [T, heads]
       xp_aug = per-head [xp_h | 1] layout  [T, heads*(d+1)]  bf16
                (ones column = fused softmax denominator)
    """
    xp = jnp.dot(h_ref[...], w_ref[...], preferred_element_type=jnp.float32)
    xp_bf = xp.astype(jnp.bfloat16)
    ad_ref[...] = jnp.dot(xp_bf, adst_ref[...], preferred_element_type=jnp.float32)
    as_ref[...] = jnp.dot(xp_bf, asrc_ref[...], preferred_element_type=jnp.float32)
    ones = jnp.ones((xp_bf.shape[0], 1), jnp.bfloat16)
    parts = []
    for hh in range(heads):
        parts.append(xp_bf[:, hh * d:(hh + 1) * d])
        parts.append(ones)
    xpaug_ref[...] = jnp.concatenate(parts, axis=1)


def _gat_attn_kernel(heads, d, ad_ref, ast_ref, adj_ref, xpaug_ref, b_ref,
                     out_ref):
    """GAT attention + aggregation + bias + ReLU for one destination-row tile."""
    neg = jnp.float32(-1e30)
    edge = adj_ref[...] != 0                               # [T, N] from int8; no f32 mask
    a_sT = ast_ref[...]                                    # [heads, N] f32
    asmax = jnp.max(a_sT, axis=1, keepdims=True)           # [heads, 1]
    ad = ad_ref[...]                                       # [T, heads] f32

    head_outs = []
    for hh in range(heads):
        a_d_col = ad[:, hh:hh + 1]                          # [T, 1]
        e = a_d_col + a_sT[hh:hh + 1, :]                    # e[i, j] = a_d[i] + a_s[j]
        e = jnp.where(e > 0, e, 0.2 * e)                    # LeakyReLU(0.2)
        e = jnp.where(edge, e, neg)                         # mask non-edges
        # Separable upper bound on the row max (softmax is shift invariant).
        m = jnp.maximum(a_d_col + asmax[hh:hh + 1, :], 0.0)  # [T, 1]
        p = jnp.exp(e - m).astype(jnp.bfloat16)             # [T, N] unnormalized
        # Fused aggregation + denominator: p @ [xp_h | 1] -> [T, d+1] on the MXU.
        sl = slice(hh * (d + 1), (hh + 1) * (d + 1))
        agg = jnp.dot(p, xpaug_ref[:, sl], preferred_element_type=jnp.float32)
        inv = pl.reciprocal(agg[:, d:d + 1], approx=True)    # EUP vrcp
        head_outs.append(agg[:, :d] * inv)

    # Concatenate heads in registers, add bias, ReLU, single store.
    h_new = jnp.concatenate(head_outs, axis=1) + b_ref[...]
    out_ref[...] = jnp.maximum(h_new, 0.0).astype(out_ref.dtype)


def _pool_fc_kernel(pool_ref, h_ref, w_ref, b_ref, out_ref):
    """global_mean_pool as a dense [G, N] matmul + fused fc_mu/fc_log_var
    (LoRA already folded into w/b); merged [G, 2*latent] store."""
    g = jnp.dot(pool_ref[...], h_ref[...], preferred_element_type=jnp.float32)
    out_ref[...] = (jnp.dot(g.astype(jnp.bfloat16), w_ref[...],
                            preferred_element_type=jnp.float32) + b_ref[...])


# ---------------------------------------------------------------------------
# Wrapper
# ---------------------------------------------------------------------------

def mpnn_encoder_vae(x, adj, pool, params, *, num_layers, heads, hidden_dim,
                     latent_dim, lora_r, lora_alpha, row_tile=None):
    n_nodes, node_features = x.shape
    num_graphs = pool.shape[0]
    d = hidden_dim // heads
    scaling = float(lora_alpha) / float(lora_r)

    if row_tile is None:
        row_tile = min(256, n_nodes)
    # TODO(synk): pad N to a multiple of row_tile (masking pad rows in adj/pool)
    # for ragged node counts.
    assert n_nodes % row_tile == 0
    n_tiles = n_nodes // row_tile

    # --- Fold LoRA into the frozen fc weights (eval mode; static at call) ----
    w_mu_eff = params["w_mu"] + scaling * (params["aT_mu"] @ params["bT_mu"])
    w_lv_eff = params["w_lv"] + scaling * (params["aT_lv"] @ params["bT_lv"])
    w_out = jnp.concatenate([w_mu_eff, w_lv_eff], axis=1).astype(jnp.bfloat16)
    b_out = jnp.concatenate([params["b_mu"], params["b_lv"]], axis=1)       # f32

    # --- Block-diagonal attention projection matrices [L, heads*d, heads] ----
    def block_diag_att(a):                                   # a: [L, 1, heads*d]
        a3 = a.reshape(num_layers, heads, d)
        eye = jnp.eye(heads, dtype=a.dtype)
        m = jnp.einsum("lhk,hj->lhkj", a3, eye)
        return m.reshape(num_layers, heads * d, heads).astype(jnp.bfloat16)

    asrc_mat = block_diag_att(params["asrc"])
    adst_mat = block_diag_att(params["adst"])

    # bf16 MXU operands everywhere; biases stay f32 (added after f32 accum).
    x_bf = x.astype(jnp.bfloat16)
    w_enc = params["w_enc"].astype(jnp.bfloat16)
    w_gat = params["w_gat"].astype(jnp.bfloat16)
    pool_bf = pool.astype(jnp.bfloat16)
    adj_i8 = adj.astype(jnp.int8)        # the only O(N^2) HBM stream, shipped narrow

    vmem_limit = _vmem_limit_bytes()
    row_params = pltpu.CompilerParams(dimension_semantics=("parallel",),
                                      vmem_limit_bytes=vmem_limit)
    flat_params = pltpu.CompilerParams(vmem_limit_bytes=vmem_limit)

    row_map = lambda i: (i, 0)
    rep_map = lambda i: (0, 0)

    # --- node encoder ---------------------------------------------------------
    h = pl.pallas_call(
        _encoder_kernel,
        out_shape=jax.ShapeDtypeStruct((n_nodes, hidden_dim), jnp.bfloat16),
        grid=(n_tiles,),
        in_specs=[
            pl.BlockSpec((row_tile, node_features), row_map),
            pl.BlockSpec((node_features, hidden_dim), rep_map),
            pl.BlockSpec((1, hidden_dim), rep_map),
        ],
        out_specs=pl.BlockSpec((row_tile, hidden_dim), row_map),
        compiler_params=row_params,
    )(x_bf, w_enc, params["b_enc"])

    proj_kernel = functools.partial(_gat_proj_kernel, heads, d)
    attn_kernel = functools.partial(_gat_attn_kernel, heads, d)
    aug = heads * (d + 1)

    # TODO(synk): add pipeline_mode=pl.Buffered(3) on the adj spec for v5e
    # (HBM-bound adj stream), and source-block tiling of xp_aug / a_srcT
    # (flash-style online softmax) once N outgrows one bf16 [N, heads*(d+1)]
    # VMEM slab.
    adj_spec = pl.BlockSpec((row_tile, n_nodes), row_map)

    for l in range(num_layers):
        xp_aug, a_d, a_s = pl.pallas_call(
            proj_kernel,
            out_shape=(
                jax.ShapeDtypeStruct((n_nodes, aug), jnp.bfloat16),
                jax.ShapeDtypeStruct((n_nodes, heads), jnp.float32),
                jax.ShapeDtypeStruct((n_nodes, heads), jnp.float32),
            ),
            grid=(n_tiles,),
            in_specs=[
                pl.BlockSpec((row_tile, hidden_dim), row_map),
                pl.BlockSpec((hidden_dim, hidden_dim), rep_map),
                pl.BlockSpec((hidden_dim, heads), rep_map),
                pl.BlockSpec((hidden_dim, heads), rep_map),
            ],
            out_specs=(
                pl.BlockSpec((row_tile, aug), row_map),
                pl.BlockSpec((row_tile, heads), row_map),
                pl.BlockSpec((row_tile, heads), row_map),
            ),
            compiler_params=row_params,
        )(h, w_gat[l], asrc_mat[l], adst_mat[l])

        a_sT = a_s.T           # [heads, N]: O(N*heads) glue transpose (XLA)

        h = pl.pallas_call(
            attn_kernel,
            out_shape=jax.ShapeDtypeStruct((n_nodes, hidden_dim), jnp.bfloat16),
            grid=(n_tiles,),
            in_specs=[
                pl.BlockSpec((row_tile, heads), row_map),
                pl.BlockSpec((heads, n_nodes), rep_map),
                adj_spec,
                pl.BlockSpec((n_nodes, aug), rep_map),
                pl.BlockSpec((1, hidden_dim), rep_map),
            ],
            out_specs=pl.BlockSpec((row_tile, hidden_dim), row_map),
            compiler_params=row_params,
        )(a_d, a_sT, adj_i8, xp_aug, params["b_gat"][l])

    # --- global_mean_pool + fc_mu / fc_log_var (LoRA folded) ------------------
    # TODO(synk): tile over graph-row blocks once num_graphs is large.
    out = pl.pallas_call(
        _pool_fc_kernel,
        out_shape=jax.ShapeDtypeStruct((num_graphs, 2 * latent_dim), jnp.float32),
        in_specs=[pl.BlockSpec(memory_space=pltpu.MemorySpace.VMEM)] * 4,
        out_specs=pl.BlockSpec(memory_space=pltpu.MemorySpace.VMEM),
        compiler_params=flat_params,
    )(pool_bf, h, w_out, b_out)

    return out[:, :latent_dim], out[:, latent_dim:]


# ---------------------------------------------------------------------------
# Pure-JAX f32 reference (original per-head formulation)
# ---------------------------------------------------------------------------

def reference(x, adj, pool, params, *, num_layers, heads,
              hidden_dim, latent_dim, lora_r, lora_alpha):
    d = hidden_dim // heads
    scaling = float(lora_alpha) / float(lora_r)
    h = x @ params["w_enc"] + params["b_enc"]
    for l in range(num_layers):
        xp = h @ params["w_gat"][l]
        outs = []
        for hh in range(heads):
            sl = slice(hh * d, (hh + 1) * d)
            xh = xp[:, sl]
            a_s = jnp.sum(xh * params["asrc"][l][:, sl], axis=-1, keepdims=True)
            a_d = jnp.sum(xh * params["adst"][l][:, sl], axis=-1, keepdims=True)
            e = a_d + a_s.T
            e = jnp.where(e > 0, e, 0.2 * e)
            e = jnp.where(adj > 0, e, -1e30)
            e = e - jnp.max(e, axis=-1, keepdims=True)
            p = jnp.exp(e)
            p = p / jnp.sum(p, axis=-1, keepdims=True)
            outs.append(p @ xh)
        h = jnp.maximum(jnp.concatenate(outs, axis=-1) + params["b_gat"][l], 0.0)
    g = pool @ h
    upd_mu = params["aT_mu"] @ params["bT_mu"]
    upd_lv = params["aT_lv"] @ params["bT_lv"]
    mu = g @ params["w_mu"] + params["b_mu"] + (g @ upd_mu) * scaling
    lv = g @ params["w_lv"] + params["b_lv"] + (g @ upd_lv) * scaling
    return mu, lv


if __name__ == "__main__":
    # Module config (small)
    node_features, hidden_dim, latent_dim = 9, 32, 16
    num_layers, heads = 3, 4
    lora_r, lora_alpha = 4, 8.0
    # Graph batch: 4 ring graphs of 16 nodes each -> N = 64 nodes, 2 row tiles.
    G, nodes_per_graph = 4, 16
    N = G * nodes_per_graph

    edges = []
    for g in range(G):
        base = g * nodes_per_graph
        for i in range(nodes_per_graph):
            j = (i + 1) % nodes_per_graph
            edges.append((base + i, base + j))
            edges.append((base + j, base + i))
    adj_np = np.zeros((N, N), np.float32)
    for src, dst in edges:
        adj_np[dst, src] = 1.0          # message flows src -> dst
    np.fill_diagonal(adj_np, 1.0)       # GATConv add_self_loops=True
    batch_np = np.repeat(np.arange(G), nodes_per_graph)
    pool_np = np.zeros((G, N), np.float32)
    for g in range(G):
        idx = np.where(batch_np == g)[0]
        pool_np[g, idx] = 1.0 / len(idx)   # global_mean_pool

    key = jax.random.PRNGKey(0)
    ks = iter(jax.random.split(key, 32))
    rnd = lambda shape: (0.1 * jax.random.normal(next(ks), shape)).astype(jnp.float32)

    params = {
        "w_enc": rnd((node_features, hidden_dim)),            # nn.Linear, pre-transposed
        "b_enc": rnd((1, hidden_dim)),
        "w_gat": rnd((num_layers, hidden_dim, hidden_dim)),    # GATConv lin (in, heads*d)
        "asrc": rnd((num_layers, 1, hidden_dim)),              # att_src flattened
        "adst": rnd((num_layers, 1, hidden_dim)),              # att_dst flattened
        "b_gat": rnd((num_layers, 1, hidden_dim)),
        "w_mu": rnd((hidden_dim, latent_dim)),
        "b_mu": rnd((1, latent_dim)),
        "aT_mu": rnd((hidden_dim, lora_r)),                    # lora_A.T
        "bT_mu": rnd((lora_r, latent_dim)),                    # lora_B.T (nonzero to exercise path)
        "w_lv": rnd((hidden_dim, latent_dim)),
        "b_lv": rnd((1, latent_dim)),
        "aT_lv": rnd((hidden_dim, lora_r)),
        "bT_lv": rnd((lora_r, latent_dim)),
    }

    x = rnd((N, node_features))
    adj = jnp.asarray(adj_np)
    pool = jnp.asarray(pool_np)

    cfg = dict(num_layers=num_layers, heads=heads, hidden_dim=hidden_dim,
               latent_dim=latent_dim, lora_r=lora_r, lora_alpha=lora_alpha)

    mu, log_var = mpnn_encoder_vae(x, adj, pool, params, row_tile=32, **cfg)
    jax.block_until_ready((mu, log_var))

    mu_ref, lv_ref = reference(x, adj, pool, params, **cfg)
    assert mu.shape == (G, latent_dim) and log_var.shape == (G, latent_dim)
    # bf16 MXU operands + approx reciprocal vs the f32 reference -> ~1e-2 rel.
    assert jnp.allclose(mu, mu_ref, atol=3e-2, rtol=3e-2), "mu mismatch"
    assert jnp.allclose(log_var, lv_ref, atol=3e-2, rtol=3e-2), "log_var mismatch"

    # TODO(synk): the empty-graph early-return branch (x is None / x.shape[0]==0)
    # is host-side Python control flow and is handled outside the kernels.
    print("KERNEL_OK")
</pallas_src>

<mosaic_0001>
module attributes {stable_mosaic.version = 11 : i64} {
  func.func @_encoder_kernel(%arg0: i32, %arg1: memref<32x9xbf16, #tpu.memory_space<vmem>>, %arg2: memref<9x32xbf16, #tpu.memory_space<vmem>>, %arg3: memref<1x32xf32, #tpu.memory_space<vmem>>, %arg4: memref<32x32xbf16, #tpu.memory_space<vmem>>) attributes {dimension_semantics = [#tpu.dimension_semantics<parallel>], iteration_bounds = array<i64: 2>, scalar_prefetch = 0 : i64, scratch_operands = 0 : i64, tpu.core_type = #tpu.core_type<tc>, window_params = [{transform_indices = @transform_0, window_bounds = array<i64: 32, 9>}, {pipeline_mode = #tpu.pipeline_mode<synchronous>, transform_indices = @transform_1, window_bounds = array<i64: 9, 32>}, {pipeline_mode = #tpu.pipeline_mode<synchronous>, transform_indices = @transform_2, window_bounds = array<i64: 1, 32>}, {transform_indices = @transform_3, window_bounds = array<i64: 32, 32>}]} {
    %c0 = arith.constant 0 : index
    %c0_0 = arith.constant 0 : index
    %0 = vector.load %arg1[%c0, %c0_0] : memref<32x9xbf16, #tpu.memory_space<vmem>>, vector<32x9xbf16>
    %c0_1 = arith.constant 0 : index
    %c0_2 = arith.constant 0 : index
    %1 = vector.load %arg2[%c0_1, %c0_2] : memref<9x32xbf16, #tpu.memory_space<vmem>>, vector<9x32xbf16>
    %cst = arith.constant dense<0.000000e+00> : vector<32x32xf32>
    %2 = tpu.matmul %0, %1, %cst {dimension_numbers = #tpu.dot_dimension_numbers<[1], [0], [0], [1], [0, 0, 1, 1], [], []>} : vector<32x9xbf16>, vector<9x32xbf16>, vector<32x32xf32> -> vector<32x32xf32>
    %c0_3 = arith.constant 0 : index
    %c0_4 = arith.constant 0 : index
    %3 = vector.load %arg3[%c0_3, %c0_4] : memref<1x32xf32, #tpu.memory_space<vmem>>, vector<1x32xf32>
    %4 = vector.broadcast %3 : vector<1x32xf32> to vector<32x32xf32>
    %5 = arith.addf %2, %4 : vector<32x32xf32>
    %6 = arith.truncf %5 : vector<32x32xf32> to vector<32x32xbf16>
    %c0_5 = arith.constant 0 : index
    %c0_6 = arith.constant 0 : index
    %7 = vector.load %arg4[%c0_5, %c0_6] : memref<32x32xbf16, #tpu.memory_space<vmem>>, vector<32x32xbf16>
    tpu.vector_store %arg4[%c0_5, %c0_6], %6 {strides = array<i32>} : memref<32x32xbf16, #tpu.memory_space<vmem>>, vector<32x32xbf16>,
    return
  }
  func.func @transform_0(%arg0: i32) -> (i32, i32) {
    %c0_i32 = arith.constant 0 : i32
    %c0_i32_0 = arith.constant 0 : i32
    return %arg0, %c0_i32 : i32, i32
  }
  func.func @transform_1(%arg0: i32) -> (i32, i32) {
    %c0_i32 = arith.constant 0 : i32
    %c0_i32_0 = arith.constant 0 : i32
    %c0_i32_1 = arith.constant 0 : i32
    return %c0_i32, %c0_i32_0 : i32, i32
  }
  func.func @transform_2(%arg0: i32) -> (i32, i32) {
    %c0_i32 = arith.constant 0 : i32
    %c0_i32_0 = arith.constant 0 : i32
    %c0_i32_1 = arith.constant 0 : i32
    return %c0_i32, %c0_i32_0 : i32, i32
  }
  func.func @transform_3(%arg0: i32) -> (i32, i32) {
    %c0_i32 = arith.constant 0 : i32
    %c0_i32_0 = arith.constant 0 : i32
    return %arg0, %c0_i32 : i32, i32
  }
}

</mosaic_0001>

<bundles_post_ra>
// kernel: tpu_custom_call.1
= control target key start
LH: loop header
LB: loop body
LE: loop exit
PB: predicated region body
PF: predicated region fallthrough
CT: control target
= control target key end

     0   :  { %s418_s12 = smov 0   ;;  %s441_s0 = inlined_call_operand.vmem [shape: bf16[64,9], index: 0, kind: input, shape index: {}]   ;;  %s442_s1 = inlined_call_operand.vmem [shape: bf16[9,32], index: 1, kind: input, shape index: {}]   ;;  %s443_s2 = inlined_call_operand.vmem [shape: f32[1,32], index: 2, kind: input, shape index: {}]   ;;  %s444_s3 = inlined_call_operand.vmem [shape: bf16[64,32], index: 3, kind: output, shape index: {}]  }
   0x1 LB: > { %s343_s13 = sadd.s32 4294967295, %s395_s12   ;;  %p347_p0 = scmp.ge.s32.totalorder %s395_s12, 1  ;;  %s395_s12 = sphi %s418_s12, %s13_s12  }
   0x2   : > { %p138_p1 = scmp.lt.s32.totalorder %s395_s12, 3 }
   0x4   : > { %p139_p2 = pnand %p347_p0, %p138_p1 }
   0x5   : > { %v386_v0 = vld [vmem:[%s442_s1] sm:$0x1f] (!%p139_p2)   ;;  %vm210_vm0 = vcmask (!%p139_p2), 1043456   ;;  %vm211_vm1 = vcmask (!%p139_p2), 1044480   ;;  %s348_s16 = sshll.u32 (!%p139_p2), %s343_s13, 2  ;;  %v397_v1 = vmov (!%p139_p2), 65535  }
   0x6   : > { %142 = sbr.rel (%p139_p2) target bundleno = 238 (0xee), region = 32  ;;  %v212_v2 = vsel (!%p139_p2), %vm210_vm0, 4294967295, %v397_v1  ;;  %p163_p3 = scmp.lt.s32.totalorder (!%p139_p2), %s348_s16, 7  ;;  %vm203_vm2 = vcmask (!%p139_p2), 72704   ;;  %v352_v7 = vld [vmem:[%s443_s2] ss:$0 sm:$0xff] (!%p139_p2) }
   0x7   : > { %v213_v3 = vsel (!%p139_p2), %vm211_vm1, %v212_v2, 0  ;;  %vm282_vm3 = vcmask (!%p139_p2), 257024  }
   0x8   : > { %v215_v4 = vand.u32 (!%p139_p2), %v386_v0, %v213_v3 }
   0xa   : > { %371 = vmatprep.subr.bf16.mxu0 (!%p139_p2), %v215_v4 }
   0xb   : > { %372 = vmatpush3.bf16.msra.mxu0 (!%p139_p2), %v215_v4 }
   0xd   : > { %s446_s16 = smov (!%p163_p3, %s348_s16), 7 }
   0xe   : > { %s349_s17 = sshll.u32 %s446_s16, 2 }
   0xf   : > { %s166_s20 = scalar_lea.vmem %s441_s0, %s349_s17  ;;  %s172_s25 = scalar_lea.vmem %s444_s3, %s349_s17 }
  0x10   : > { %v387_v5 = vld [vmem:[%s166_s20] sm:$0xff]   ;;  %v388_v6 = vld [vmem:[%s166_s20 + $0x8] sm:$0xff]  }
  0x11   : > { %373 = vmatprep.mubr.msk.bf16.mxu0 %vm203_vm2, %v387_v5 }
  0x12   : > { %374 = vmatmul.mubr.msk.bf16.vlgmr.msra.gmra.mrb[0].mxu0 %vm203_vm2, %v388_v6 }
  0xe5   : > { %v375_v8 = vpop.f32.mrb[0].mxu0 }
  0xe6   : > { %v251_v9 = vpop.f32.mrb[1].mxu0  ;;  %v260_v12 = vadd.f32 %v375_v8, %v352_v7 }
  0xe7   : > { %v252_v10 = vadd.f32 %v352_v7, %v251_v9  ;;  %v376_v11 = vpop.f32.mrb[2].mxu0 }
  0xe8   : > { %v254_v13 = vpop.f32.mrb[3].mxu0  ;;  %v263_v15 = vadd.f32 %v376_v11, %v352_v7  ;;  %v366_v18 = vpack.c.bf16 %v260_v12, %v260_v12 }
  0xe9   : > { %v364_v14 = vpack.c.bf16 %v252_v10, %v252_v10  ;;  %v255_v16 = vadd.f32 %v352_v7, %v254_v13 }
  0xea   : > { %v367_v19 = vpack.c.bf16 %v263_v15, %v263_v15  ;;  %285 = vst.msk [vmem:[%s172_s25 + $0x8] sm:$0xf] %vm282_vm3, %v366_v18 }
  0xeb   : > { %283 = vst.msk [vmem:[%s172_s25] sm:$0xf] %vm282_vm3, %v364_v14  ;;  %v365_v17 = vpack.c.bf16 %v255_v16, %v255_v16 }
  0xec   : > { %286 = vst.msk [vmem:[%s172_s25 + $0xc] sm:$0xf] %vm282_vm3, %v367_v19 }
  0xed   : > { %284 = vst.msk [vmem:[%s172_s25 + $0x4] sm:$0xf] %vm282_vm3, %v365_v17 }
  0xee PF: > { %s13_s12 = sadd.s32 1, %s395_s12  }
  0xef   : > { %p10_p4 = scmp.ge.s32.totalorder %s13_s12, 4  }
  0xf1   :  { %12 = sbr.rel (!%p10_p4) target bundleno = 1 (0x1), region = 62 }

</bundles_post_ra>
